<compile_context>
chip_gen: v6e
topology: v6e:2x2x1
jax: 0.10.0
libtpu: 0.0.40
codegen_flags: <defaults>
</compile_context>

<pallas_src>
import functools

import jax
import jax.numpy as jnp
from jax.experimental import pallas as pl
from jax.experimental.pallas import tpu as pltpu


def _round_up(v, m):
    return (v + m - 1) // m * m


def _sat_conv_kernel(x_ref, satT_ref, chebT_ref, thetaB_ref, o_ref, z_ref):
    # x_ref:      (1, Np, C)         graph signal for batch b, C = F_in*T (cols = i*T + t)
    # satT_ref:   (1, Np, Np)        spatial attention, pre-transposed: satT[n, m] = sat[b, m, n]
    # chebT_ref:  (K, Np, Np)        Chebyshev polys, pre-transposed (grid-invariant)
    # thetaB_ref: (K*C, F_out*T)     stacked Theta_k ⊗ I_T (rows = k*C + i*T + t') (grid-invariant)
    # o_ref:      (1, Np, F_out*T)   lane-dense output (cols = o*T + t)
    # z_ref:      (Np, K*C)          VMEM scratch: stage-1 results for all k, column-blocked
    K = chebT_ref.shape[0]
    C = x_ref.shape[-1]

    xb = x_ref[0]                                    # (Np, C)
    satT = satT_ref[0]                               # (Np, Np)

    # Stage 1: one MXU matmul per Chebyshev order, written into column block k of the
    # scratch so stage 2 can be a single deep contraction.
    #   z[n, k*C + i*T + t] = sum_m cheb[k,m,n] * sat[b,m,n] * x[b,m,i,t]
    for k in range(K):                               # K is small and static -> unrolled
        a_k = chebT_ref[k] * satT                    # A[n, m] = cheb[k,m,n] * sat[b,m,n]
        z_ref[:, k * C:(k + 1) * C] = jnp.dot(
            a_k, xb, preferred_element_type=jnp.float32).astype(z_ref.dtype)

    # Stage 2: single MXU matmul, contraction depth K*C, lane-dense (Np, F_out*T) output.
    acc = jnp.dot(z_ref[...], thetaB_ref[...], preferred_element_type=jnp.float32)
    o_ref[0] = jnp.maximum(acc, 0.0).astype(o_ref.dtype)            # ReLU, unmasked store


@functools.partial(jax.jit, static_argnames=("compute_dtype",))
def sat_conv(x, sat, cheb, theta, compute_dtype=jnp.float32):
    """x: (B, N, F_in, T), sat: (B, N, N), cheb: (K, N, N), theta: (K, F_in, F_out).
    Returns (B, N, F_out, T), matching SAT_Conv.forward.

    compute_dtype: dtype of the MXU operands (jnp.bfloat16 for the fast production path;
    accumulation is always f32 and the result is returned in x.dtype)."""
    B, N, F_in, T = x.shape
    K = cheb.shape[0]
    F_out = theta.shape[-1]
    out_dtype = x.dtype

    # ---- wrapper-side prep (one-time / cheap) -----------------------------------------
    Np = _round_up(N, 8)                             # sublane alignment (pad contributes 0)
    pad_n = Np - N

    x_flat = x.reshape(B, N, F_in * T)               # free contiguous reshape (cols = i*T + t)
    sat_T = jnp.transpose(sat, (0, 2, 1))            # removes per-step XLU transposes
    cheb_T = jnp.transpose(cheb, (0, 2, 1))          # tiny, one-time
    if pad_n:
        x_flat = jnp.pad(x_flat, ((0, 0), (0, pad_n), (0, 0)))
        sat_T = jnp.pad(sat_T, ((0, 0), (0, pad_n), (0, pad_n)))
        cheb_T = jnp.pad(cheb_T, ((0, 0), (0, pad_n), (0, pad_n)))

    # Theta_k ⊗ I_T, flattened to (K*F_in*T, F_out*T); row order k*C + i*T + t' matches the
    # stage-1 scratch column order, column order o*T + t matches the final reshape.
    eye_t = jnp.eye(T, dtype=theta.dtype)
    theta_big = jnp.einsum("kio,ab->kiaob", theta, eye_t).reshape(
        K * F_in * T, F_out * T)

    # bf16 MXU operands (with f32 accumulation in-kernel) use the fast MXU path on all
    # generations and halve HBM/VMEM traffic; f32 keeps exact numerics for validation.
    x_flat = x_flat.astype(compute_dtype)
    sat_T = sat_T.astype(compute_dtype)
    cheb_T = cheb_T.astype(compute_dtype)
    theta_big = theta_big.astype(compute_dtype)

    C = F_in * T
    CO = F_out * T
    itm = jnp.dtype(compute_dtype).itemsize
    out_itm = jnp.dtype(out_dtype).itemsize

    # Explicit VMEM budget: double-buffered per-batch blocks + single-buffered grid-invariant
    # operands + stage-1 scratch, with headroom (review: set vmem_limit_bytes explicitly).
    vmem_bytes = (
        2 * (Np * C + Np * Np) * itm                 # x, sat blocks (double-buffered)
        + 2 * Np * CO * out_itm                      # out block (double-buffered)
        + (K * Np * Np + K * C * CO) * itm           # cheb_T, theta_big (single-buffered)
        + Np * K * C * itm                           # z scratch
    )
    vmem_limit = int(max(2 * vmem_bytes + (1 << 20), 16 << 20))

    out_flat = pl.pallas_call(
        _sat_conv_kernel,
        out_shape=jax.ShapeDtypeStruct((B, Np, CO), out_dtype),
        grid_spec=pltpu.PrefetchScalarGridSpec(
            num_scalar_prefetch=0,
            grid=(B,),                               # T and K fused into the block
            in_specs=[
                pl.BlockSpec((1, Np, C), lambda b: (b, 0, 0)),
                pl.BlockSpec((1, Np, Np), lambda b: (b, 0, 0)),
                pl.BlockSpec((K, Np, Np), lambda b: (0, 0, 0),
                             pipeline_mode=pl.Buffered(1)),       # grid-invariant
                pl.BlockSpec((K * C, CO), lambda b: (0, 0),
                             pipeline_mode=pl.Buffered(1)),       # grid-invariant
            ],
            out_specs=pl.BlockSpec((1, Np, CO), lambda b: (b, 0, 0)),
            scratch_shapes=[pltpu.VMEM((Np, K * C), compute_dtype)],
        ),
        compiler_params=pltpu.CompilerParams(
            dimension_semantics=("parallel",),       # shardable across v7x's 2 TensorCores
            vmem_limit_bytes=vmem_limit),
    )(x_flat, sat_T, cheb_T, theta_big)

    # Drop node padding; free reshape back to the PyTorch layout (no HBM transpose pass).
    return out_flat[:, :N, :].reshape(B, N, F_out, T)


def sat_conv_ref(x, sat, cheb, theta):
    out = jnp.einsum("kmn,bmn,bmit,kio->bnot", cheb, sat, x, theta)
    return jnp.maximum(out, 0.0)


if __name__ == "__main__":
    key = jax.random.PRNGKey(0)
    B, N, F_in, F_out, T, K = 2, 16, 4, 32, 8, 3

    k1, k2, k3, k4 = jax.random.split(key, 4)
    # Inputs implied by forward(): x (B, vertices, inputs, timesteps), sat (B, N, N).
    x = jax.random.normal(k1, (B, N, F_in, T), dtype=jnp.float32)
    sat = jax.nn.softmax(jax.random.normal(k2, (B, N, N), dtype=jnp.float32), axis=-1)
    # Deterministic synthetic Chebyshev polynomials and Theta parameters
    # (module's __init__ leaves Theta uninitialized; we init with a fixed key).
    cheb = jax.random.normal(k3, (K, N, N), dtype=jnp.float32) / N
    theta = jax.random.normal(k4, (K, F_in, F_out), dtype=jnp.float32) * 0.1

    ref = sat_conv_ref(x, sat, cheb, theta)

    # Exact-numerics path (f32 MXU operands).
    out_f32 = jax.block_until_ready(sat_conv(x, sat, cheb, theta,
                                             compute_dtype=jnp.float32))
    assert out_f32.shape == (B, N, F_out, T), out_f32.shape
    assert jnp.allclose(out_f32, ref, atol=1e-4, rtol=1e-4), \
        float(jnp.max(jnp.abs(out_f32 - ref)))

    # Fast production path: bf16 MXU operands, f32 accumulation.
    out_bf16 = jax.block_until_ready(sat_conv(x, sat, cheb, theta,
                                              compute_dtype=jnp.bfloat16))
    assert out_bf16.shape == (B, N, F_out, T), out_bf16.shape
    assert jnp.allclose(out_bf16, ref, atol=1e-2, rtol=5e-2), \
        float(jnp.max(jnp.abs(out_bf16 - ref)))

    print("KERNEL_OK")
</pallas_src>

<mosaic_0001>
module attributes {stable_mosaic.version = 11 : i64} {
  func.func @_sat_conv_kernel(%arg0: i32, %arg1: memref<1x16x32xf32, #tpu.memory_space<vmem>>, %arg2: memref<1x16x16xf32, #tpu.memory_space<vmem>>, %arg3: memref<3x16x16xf32, #tpu.memory_space<vmem>>, %arg4: memref<96x256xf32, #tpu.memory_space<vmem>>, %arg5: memref<1x16x256xf32, #tpu.memory_space<vmem>>, %arg6: memref<16x96xf32, #tpu.memory_space<vmem>>) attributes {dimension_semantics = [#tpu.dimension_semantics<parallel>], iteration_bounds = array<i64: 2>, scalar_prefetch = 0 : i64, scratch_operands = 1 : i64, tpu.core_type = #tpu.core_type<tc>, window_params = [{transform_indices = @transform_0, window_bounds = array<i64: 1, 16, 32>}, {transform_indices = @transform_1, window_bounds = array<i64: 1, 16, 16>}, {pipeline_mode = #tpu.pipeline_mode<synchronous>, transform_indices = @transform_2, window_bounds = array<i64: 3, 16, 16>}, {pipeline_mode = #tpu.pipeline_mode<synchronous>, transform_indices = @transform_3, window_bounds = array<i64: 96, 256>}, {transform_indices = @transform_4, window_bounds = array<i64: 1, 16, 256>}]} {
    %c0 = arith.constant 0 : index
    %c0_0 = arith.constant 0 : index
    %c0_1 = arith.constant 0 : index
    %0 = vector.load %arg1[%c0, %c0_0, %c0_1] : memref<1x16x32xf32, #tpu.memory_space<vmem>>, vector<1x16x32xf32>
    %1 = vector.shape_cast %0 : vector<1x16x32xf32> to vector<16x32xf32>
    %c0_2 = arith.constant 0 : index
    %c0_3 = arith.constant 0 : index
    %c0_4 = arith.constant 0 : index
    %2 = vector.load %arg2[%c0_2, %c0_3, %c0_4] : memref<1x16x16xf32, #tpu.memory_space<vmem>>, vector<1x16x16xf32>
    %3 = vector.shape_cast %2 : vector<1x16x16xf32> to vector<16x16xf32>
    %c0_5 = arith.constant 0 : index
    %c0_6 = arith.constant 0 : index
    %c0_7 = arith.constant 0 : index
    %4 = vector.load %arg3[%c0_5, %c0_6, %c0_7] : memref<3x16x16xf32, #tpu.memory_space<vmem>>, vector<1x16x16xf32>
    %5 = vector.shape_cast %4 : vector<1x16x16xf32> to vector<16x16xf32>
    %6 = arith.mulf %5, %3 : vector<16x16xf32>
    %cst = arith.constant dense<0.000000e+00> : vector<16x32xf32>
    %7 = tpu.matmul %6, %1, %cst {dimension_numbers = #tpu.dot_dimension_numbers<[1], [0], [0], [1], [0, 0, 1, 1], [], []>} : vector<16x16xf32>, vector<16x32xf32>, vector<16x32xf32> -> vector<16x32xf32>
    %c0_8 = arith.constant 0 : index
    %c0_9 = arith.constant 0 : index
    %8 = vector.load %arg6[%c0_8, %c0_9] : memref<16x96xf32, #tpu.memory_space<vmem>>, vector<16x32xf32>
    tpu.vector_store %arg6[%c0_8, %c0_9], %7 {strides = array<i32>} : memref<16x96xf32, #tpu.memory_space<vmem>>, vector<16x32xf32>,
    %c1 = arith.constant 1 : index
    %c0_10 = arith.constant 0 : index
    %c0_11 = arith.constant 0 : index
    %9 = vector.load %arg3[%c1, %c0_10, %c0_11] : memref<3x16x16xf32, #tpu.memory_space<vmem>>, vector<1x16x16xf32>
    %10 = vector.shape_cast %9 : vector<1x16x16xf32> to vector<16x16xf32>
    %11 = arith.mulf %10, %3 : vector<16x16xf32>
    %cst_12 = arith.constant dense<0.000000e+00> : vector<16x32xf32>
    %12 = tpu.matmul %11, %1, %cst_12 {dimension_numbers = #tpu.dot_dimension_numbers<[1], [0], [0], [1], [0, 0, 1, 1], [], []>} : vector<16x16xf32>, vector<16x32xf32>, vector<16x32xf32> -> vector<16x32xf32>
    %c0_13 = arith.constant 0 : index
    %c32 = arith.constant 32 : index
    %13 = vector.load %arg6[%c0_13, %c32] : memref<16x96xf32, #tpu.memory_space<vmem>>, vector<16x32xf32>
    tpu.vector_store %arg6[%c0_13, %c32], %12 {strides = array<i32>} : memref<16x96xf32, #tpu.memory_space<vmem>>, vector<16x32xf32>,
    %c2 = arith.constant 2 : index
    %c0_14 = arith.constant 0 : index
    %c0_15 = arith.constant 0 : index
    %14 = vector.load %arg3[%c2, %c0_14, %c0_15] : memref<3x16x16xf32, #tpu.memory_space<vmem>>, vector<1x16x16xf32>
    %15 = vector.shape_cast %14 : vector<1x16x16xf32> to vector<16x16xf32>
    %16 = arith.mulf %15, %3 : vector<16x16xf32>
    %cst_16 = arith.constant dense<0.000000e+00> : vector<16x32xf32>
    %17 = tpu.matmul %16, %1, %cst_16 {dimension_numbers = #tpu.dot_dimension_numbers<[1], [0], [0], [1], [0, 0, 1, 1], [], []>} : vector<16x16xf32>, vector<16x32xf32>, vector<16x32xf32> -> vector<16x32xf32>
    %c0_17 = arith.constant 0 : index
    %c64 = arith.constant 64 : index
    %18 = vector.load %arg6[%c0_17, %c64] : memref<16x96xf32, #tpu.memory_space<vmem>>, vector<16x32xf32>
    tpu.vector_store %arg6[%c0_17, %c64], %17 {strides = array<i32>} : memref<16x96xf32, #tpu.memory_space<vmem>>, vector<16x32xf32>,
    %c0_18 = arith.constant 0 : index
    %c0_19 = arith.constant 0 : index
    %19 = vector.load %arg6[%c0_18, %c0_19] : memref<16x96xf32, #tpu.memory_space<vmem>>, vector<16x96xf32>
    %c0_20 = arith.constant 0 : index
    %c0_21 = arith.constant 0 : index
    %20 = vector.load %arg4[%c0_20, %c0_21] : memref<96x256xf32, #tpu.memory_space<vmem>>, vector<96x256xf32>
    %cst_22 = arith.constant dense<0.000000e+00> : vector<16x256xf32>
    %21 = tpu.matmul %19, %20, %cst_22 {dimension_numbers = #tpu.dot_dimension_numbers<[1], [0], [0], [1], [0, 0, 1, 1], [], []>} : vector<16x96xf32>, vector<96x256xf32>, vector<16x256xf32> -> vector<16x256xf32>
    %cst_23 = arith.constant 0.000000e+00 : f32
    %22 = vector.broadcast %cst_23 : f32 to vector<16x256xf32>
    %23 = arith.maximumf %21, %22 : vector<16x256xf32>
    %c0_24 = arith.constant 0 : index
    %c0_25 = arith.constant 0 : index
    %c0_26 = arith.constant 0 : index
    %24 = vector.load %arg5[%c0_24, %c0_25, %c0_26] : memref<1x16x256xf32, #tpu.memory_space<vmem>>, vector<1x16x256xf32>
    %25 = vector.shape_cast %24 : vector<1x16x256xf32> to vector<16x256xf32>
    %26 = vector.shape_cast %23 : vector<16x256xf32> to vector<1x16x256xf32>
    tpu.vector_store %arg5[%c0_24, %c0_25, %c0_26], %26 {strides = array<i32>} : memref<1x16x256xf32, #tpu.memory_space<vmem>>, vector<1x16x256xf32>,
    return
  }
  func.func @transform_0(%arg0: i32) -> (i32, i32, i32) {
    %c0_i32 = arith.constant 0 : i32
    %c0_i32_0 = arith.constant 0 : i32
    %c0_i32_1 = arith.constant 0 : i32
    return %arg0, %c0_i32, %c0_i32_0 : i32, i32, i32
  }
  func.func @transform_1(%arg0: i32) -> (i32, i32, i32) {
    %c0_i32 = arith.constant 0 : i32
    %c0_i32_0 = arith.constant 0 : i32
    %c0_i32_1 = arith.constant 0 : i32
    return %arg0, %c0_i32, %c0_i32_0 : i32, i32, i32
  }
  func.func @transform_2(%arg0: i32) -> (i32, i32, i32) {
    %c0_i32 = arith.constant 0 : i32
    %c0_i32_0 = arith.constant 0 : i32
    %c0_i32_1 = arith.constant 0 : i32
    %c0_i32_2 = arith.constant 0 : i32
    return %c0_i32, %c0_i32_0, %c0_i32_1 : i32, i32, i32
  }
  func.func @transform_3(%arg0: i32) -> (i32, i32) {
    %c0_i32 = arith.constant 0 : i32
    %c0_i32_0 = arith.constant 0 : i32
    %c0_i32_1 = arith.constant 0 : i32
    return %c0_i32, %c0_i32_0 : i32, i32
  }
  func.func @transform_4(%arg0: i32) -> (i32, i32, i32) {
    %c0_i32 = arith.constant 0 : i32
    %c0_i32_0 = arith.constant 0 : i32
    %c0_i32_1 = arith.constant 0 : i32
    return %arg0, %c0_i32, %c0_i32_0 : i32, i32, i32
  }
}

</mosaic_0001>

<bundles_post_ra>
// kernel: sat_conv.1
= control target key start
LH: loop header
LB: loop body
LE: loop exit
PB: predicated region body
PF: predicated region fallthrough
CT: control target
= control target key end

     0   :  { %s798_s15 = smov 0   ;;  %s920_s0 = inlined_call_operand.vmem [shape: f32[2,16,32], index: 0, kind: input, shape index: {}]   ;;  %s921_s1 = inlined_call_operand.vmem [shape: f32[2,16,16], index: 1, kind: input, shape index: {}]   ;;  %s922_s2 = inlined_call_operand.vmem [shape: f32[3,16,16], index: 2, kind: input, shape index: {}]   ;;  %s923_s3 = inlined_call_operand.vmem [shape: f32[96,256], index: 3, kind: input, shape index: {}]   ;;  %s924_s4 = inlined_call_operand.vmem [shape: f32[2,16,256], index: 4, kind: output, shape index: {}]  }
   0x1 LB: > { %s690_s16 = sadd.s32 4294967295, %s768_s15   ;;  %p694_p0 = scmp.ge.s32.totalorder %s768_s15, 1  ;;  %s768_s15 = sphi %s798_s15, %s14_s15  }
   0x2   : > { %p172_p1 = scmp.lt.s32.totalorder %s768_s15, 3 }
   0x4   : > { %p173_p2 = pnand %p694_p0, %p172_p1 }
   0x5   : > { %p203_p3 = scmp.lt.s32.totalorder (!%p173_p2), %s690_s16, 1  ;;  %s771_s10 = smov (!%p173_p2), 32  }
   0x6   : > { %176 = sbr.rel (%p173_p2) target bundleno = 547 (0x223), region = 36  ;;  %s772_s11 = smov (!%p173_p2), 64  }
   0xb   : > { %s926_s16 = smov (!%p203_p3, %s690_s16), 1  ;;  %v222_v0 = vld [vmem:[%s922_s2] sm:$0xff]  ;;  %v703_v1 = vld [vmem:[%s922_s2 + $0x10] sm:$0xff]  ;;  %v223_v2 = vld [vmem:[%s922_s2 + $0x8] sm:$0xff]  ;;  %vm226_vm0 = vcmask 130048   ;;  %vm308_vm1 = vcmask 261120  }
   0xc   : > { %s715_s17 = sshll.u32 %s926_s16, 4  ;;  %v704_v8 = vld [vmem:[%s922_s2 + $0x18] sm:$0xff]  ;;  %v707_v11 = vld [vmem:[%s922_s2 + $0x20] sm:$0xff]  ;;  %v708_v13 = vld [vmem:[%s922_s2 + $0x28] sm:$0xff]  ;;  %v770_v37 = vmov 0.0   ;;  %vm405_vm2 = vcmask 523520  }
   0xd   : > { %s207_s22 = scalar_lea.vmem %s920_s0, %s715_s17  ;;  %s212_s25 = scalar_lea.vmem %s921_s1, %s715_s17  ;;  %v530_v16 = vld [vmem:[%s923_s3 + $0xb8] sm:$0xff]  ;;  %v529_v17 = vld [vmem:[%s923_s3 + $0xb0] sm:$0xff]  ;;  %v528_v18 = vld [vmem:[%s923_s3 + $0xa8] sm:$0xff]  ;;  %602 = vmatprep.mubr.f32.mxu1 %v770_v37  ;;  %vm502_vm3 = vcmask 785920   ;;  %vm531_vm4 = vcmask 785408  }
   0xe   : > { %v219_v3 = vld [vmem:[%s207_s22 + $0x8] sm:$0xff]  ;;  %v218_v4 = vld [vmem:[%s207_s22] sm:$0xff]  ;;  %546 = vmatprep.subr.mxu1 %v530_v16  ;;  %v526_v20 = vld [vmem:[%s923_s3 + $0x98] sm:$0xff]  ;;  %s717_s12 = sshll.u32 %s926_s16, 5 }
   0xf   : > { %v220_v5 = vld [vmem:[%s212_s25] sm:$0xff]  ;;  %730 = vmatprep.subr.mxu0 %v219_v3  ;;  %v221_v6 = vld [vmem:[%s212_s25 + $0x8] sm:$0xff]  ;;  %547 = vmatpush1.msra.mxu1 %v529_v17  ;;  %v525_v21 = vld [vmem:[%s923_s3 + $0x90] sm:$0xff]  ;;  %s217_s17 = scalar_lea.vmem %s924_s4, %s717_s12 }
  0x10   : > { %v224_v7 = vmul.f32 %v222_v0, %v220_v5  ;;  %731 = vmatpush3.msra.mxu0 %v219_v3  ;;  %v314_v9 = vmul.f32 %v703_v1, %v220_v5  ;;  %v225_v10 = vmul.f32 %v223_v2, %v221_v6  ;;  %v315_v12 = vmul.f32 %v704_v8, %v221_v6  ;;  %v527_v19 = vld [vmem:[%s923_s3 + $0xa0] sm:$0xff]  ;;  %v524_v22 = vld [vmem:[%s923_s3 + $0x88] sm:$0xff]  ;;  %v522_v24 = vld [vmem:[%s923_s3 + $0x78] sm:$0xff] }
  0x11   : > { %732 = vmatprep.subr.mxu0 %v218_v4  ;;  %v411_v14 = vmul.f32 %v707_v11, %v220_v5  ;;  %v412_v15 = vmul.f32 %v708_v13, %v221_v6  ;;  %548 = vmatprep.subr.mxu1 %v528_v18  ;;  %v523_v23 = vld [vmem:[%s923_s3 + $0x80] sm:$0xff]  ;;  %v521_v25 = vld [vmem:[%s923_s3 + $0x70] sm:$0xff]  ;;  %v520_v26 = vld [vmem:[%s923_s3 + $0x68] sm:$0xff] }
  0x12   : > { %734 = vmatprep.mubr.msk.f32.mxu0 %vm226_vm0, %v224_v7  ;;  %733 = vmatpush3.msra.mxu0 %v218_v4  ;;  %v519_v27 = vld [vmem:[%s923_s3 + $0x60] sm:$0xff]  ;;  %v518_v28 = vld [vmem:[%s923_s3 + $0x58] sm:$0xff]  ;;  %v517_v29 = vld [vmem:[%s923_s3 + $0x50] sm:$0xff] }
  0x13   : > { %735 = vmatmul.mubr.msk.f32.vlgmr.msra.gmra.mxu0 %vm226_vm0, %v225_v10  ;;  %737 = vmatprep.subr.mxu0 %v219_v3  ;;  %v516_v30 = vld [vmem:[%s923_s3 + $0x48] sm:$0xff]  ;;  %v515_v31 = vld [vmem:[%s923_s3 + $0x40] sm:$0xff]  ;;  %v514_v32 = vld [vmem:[%s923_s3 + $0x38] sm:$0xff] }
  0x14   : > { %738 = vmatpush3.msra.mxu0 %v219_v3  ;;  %741 = vmatprep.mubr.msk.f32.mxu0 %vm226_vm0, %v314_v9  ;;  %v513_v33 = vld [vmem:[%s923_s3 + $0x30] sm:$0xff]  ;;  %v512_v34 = vld [vmem:[%s923_s3 + $0x28] sm:$0xff]  ;;  %v511_v35 = vld [vmem:[%s923_s3 + $0x20] sm:$0xff] }
  0x15   : > { %739 = vmatprep.subr.mxu0 %v218_v4  ;;  %549 = vmatpush1.msra.mxu1 %v527_v19  ;;  %v510_v36 = vld [vmem:[%s923_s3 + $0x18] sm:$0xff]  ;;  %v509_v39 = vld [vmem:[%s923_s3 + $0x10] sm:$0xff]  ;;  %v508_v40 = vld [vmem:[%s923_s3 + $0x8] sm:$0xff] }
  0x16   : > { %740 = vmatpush3.msra.mxu0 %v218_v4  ;;  %550 = vmatprep.subr.mxu1 %v526_v20  ;;  %v507_v42 = vld [vmem:[%s923_s3] sm:$0xff] }
  0x17   : > { %742 = vmatmul.mubr.msk.f32.vlgmr.msra.gmra.mxu0 %vm226_vm0, %v315_v12  ;;  %744 = vmatprep.subr.mxu0 %v219_v3 }
  0x18   : > { %745 = vmatpush3.msra.mxu0 %v219_v3  ;;  %748 = vmatprep.mubr.msk.f32.mxu0 %vm226_vm0, %v411_v14 }
  0x19   : > { %746 = vmatprep.subr.mxu0 %v218_v4  ;;  %551 = vmatpush1.msra.mxu1 %v525_v21 }
  0x1a   : > { %747 = vmatpush3.msra.mxu0 %v218_v4  ;;  %552 = vmatprep.subr.mxu1 %v524_v22 }
  0x1b   : > { %749 = vmatmul.mubr.msk.f32.vlgmr.msra.gmra.mxu0 %vm226_vm0, %v412_v15  ;;  %553 = vmatpush1.msra.mxu1 %v523_v23 }
  0x1c   : > { %554 = vmatprep.subr.mxu1 %v522_v24 }
  0x1d   : > { %555 = vmatpush1.msra.mxu1 %v521_v25 }
  0x1e   : > { %556 = vmatprep.subr.mxu1 %v520_v26 }
  0x1f   : > { %557 = vmatpush1.msra.mxu1 %v519_v27 }
  0x20   : > { %558 = vmatprep.subr.mxu1 %v518_v28 }
  0x21   : > { %559 = vmatpush1.msra.mxu1 %v517_v29 }
  0x22   : > { %560 = vmatprep.subr.mxu1 %v516_v30 }
  0x23   : > { %561 = vmatpush1.msra.mxu1 %v515_v31 }
  0x24   : > { %562 = vmatprep.subr.mxu1 %v514_v32 }
  0x25   : > { %563 = vmatpush1.msra.mxu1 %v513_v33 }
  0x26   : > { %564 = vmatprep.subr.mxu1 %v512_v34 }
  0x27   : > { %565 = vmatpush1.msra.mxu1 %v511_v35 }
  0x28   : > { %566 = vmatprep.subr.mxu1 %v510_v36 }
  0x29   : > { %567 = vmatpush1.msra.mxu1 %v509_v39 }
  0x2a   : > { %568 = vmatprep.subr.mxu1 %v508_v40 }
  0x2b   : > { %569 = vmatpush1.msra.mxu1 %v507_v42 }
  0xd3   : > { %v736_v38 = vpop.f32.mrf.mxu0 }
  0xd4   : > { %310 = vst.msk [vmem:[#allocation2 + $0x8] sm:$0xff] %vm308_vm1, %v736_v38 }
  0xd5   : > { %v299_v41 = vpop.f32.mrf.mxu0 }
  0xd6   : > { %309 = vst.msk [vmem:[#allocation2] sm:$0xff] %vm308_vm1, %v299_v41 }
  0xd7   : > { %v743_v43 = vpop.f32.mrf.mxu0 }
  0xd8   : > { %401 = vrot.lane.b32.xlu1 %v743_v43, %s771_s10 }
  0xd9   : > { %v388_v44 = vpop.f32.mrf.mxu0 }
  0xda   : > { %399 = vrot.lane.b32.xlu0 %v388_v44, %s771_s10 }
  0xdb   : > { %v750_v45 = vpop.f32.mrf.mxu0 }
  0xdc   : > { %498 = vrot.lane.b32.xlu1 %v750_v45, %s772_s11 }
  0xdd   : > { %v485_v46 = vpop.f32.mrf.mxu0 }
  0xde   : > { %496 = vrot.lane.b32.xlu0 %v485_v46, %s772_s11 }
 0x14a   : > { %v402_v47 = vpop.permute.xlu1 %401 }
 0x14b   : > { %407 = vst.msk [vmem:[#allocation2 + $0x8] sm:$0xff] %vm405_vm2, %v402_v47 }
 0x14c   : > { %v400_v48 = vpop.permute.xlu0 %399 }
 0x14d   : > { %406 = vst.msk [vmem:[#allocation2] sm:$0xff] %vm405_vm2, %v400_v48 }
 0x14e   : > { %v499_v49 = vpop.permute.xlu1 %498 }
 0x14f   : > { %504 = vst.msk [vmem:[#allocation2 + $0x8] sm:$0xff] %vm502_vm3, %v499_v49 }
 0x150   : > { %v497_v50 = vpop.permute.xlu0 %496 }
 0x151   : > { %503 = vst.msk [vmem:[#allocation2] sm:$0xff] %vm502_vm3, %v497_v50 }
 0x156   : > { %v506_v52 = vld [vmem:[#allocation2 + $0x8] sm:$0xff] }
 0x158   : > { %v505_v51 = vld [vmem:[#allocation2] sm:$0xff] }
 0x159   : > { %711 = vmatmul.mubr.msk.f32.vlgmr.msra.gmra.mxu1 %vm531_vm4, %v505_v51 }
 0x15a   : > { %608 = vmatprep.mubr.f32.mxu1 %v770_v37 }
 0x15d   : > { %712 = vmatmul.mubr.msk.f32.gmra.mxu1 %vm531_vm4, %v506_v52 }
 0x219   : > { %v604_v53 = vpop.f32.mrf.mxu1 }
 0x21a   : > { %v615_v54 = vmax.f32 %v604_v53, 0.0 }
 0x21b   : > { %v606_v55 = vpop.f32.mrf.mxu1 }
 0x21c   : > { %619 = vst [vmem:[%s217_s17] sm:$0xff] %v615_v54  ;;  %v616_v56 = vmax.f32 %v606_v55, 0.0 }
 0x21d   : > { %v610_v57 = vpop.f32.mrf.mxu1 }
 0x21e   : > { %620 = vst [vmem:[%s217_s17 + $0x8] sm:$0xff] %v616_v56  ;;  %v617_v58 = vmax.f32 %v610_v57, 0.0 }
 0x21f   : > { %v612_v59 = vpop.f32.mrf.mxu1 }
 0x220   : > { %621 = vst [vmem:[%s217_s17 + $0x10] sm:$0xff] %v617_v58  ;;  %v618_v60 = vmax.f32 %v612_v59, 0.0 }
 0x222   : > { %622 = vst [vmem:[%s217_s17 + $0x18] sm:$0xff] %v618_v60 }
 0x223 PF: > { %s14_s15 = sadd.s32 1, %s768_s15  }
 0x224   : > { %p11_p4 = scmp.ge.s32.totalorder %s14_s15, 4  }
 0x226   :  { %13 = sbr.rel (!%p11_p4) target bundleno = 1 (0x1), region = 71 }

</bundles_post_ra>
